<compile_context>
chip_gen: v6e
topology: v6e:2x2x1
jax: 0.10.0
libtpu: 0.0.40
codegen_flags: <defaults>
</compile_context>

<pallas_src>
import jax
import jax.numpy as jnp
from jax.experimental import pallas as pl
from jax.experimental.pallas import tpu as pltpu

H = 32  # padded hidden/feature width (multiple of 8 sublanes, >= max hidden 20)


def _net_kernel(x_ref, w1_ref, b1_ref, w2_ref, b2_ref, w3_ref, b3_ref,
                w4_ref, b4_ref, o_ref):
    # x_ref: (1, TILE_N) — batch along lanes.
    x = x_ref[...]

    # fc1 (in_features = 1): outer product via broadcast, no MXU needed.
    h = jnp.maximum(w1_ref[...] * x + b1_ref[...], 0.0)            # (H, TILE_N)

    # fc2 / fc3: zero-padded (H, H) weights on the MXU.
    h = jnp.maximum(
        jnp.dot(w2_ref[...], h, preferred_element_type=jnp.float32)
        + b2_ref[...], 0.0)                                         # (H, TILE_N)
    h = jnp.maximum(
        jnp.dot(w3_ref[...], h, preferred_element_type=jnp.float32)
        + b3_ref[...], 0.0)                                         # (H, TILE_N)

    # fc4 (out_features = 1): weighted sublane reduction (XLU) + scalar bias.
    y = jnp.sum(w4_ref[...] * h, axis=0, keepdims=True) + b4_ref[0, 0]  # (1, TILE_N)
    o_ref[...] = y.astype(o_ref.dtype)


def _pad2d(a, rows, cols):
    a = jnp.asarray(a, jnp.float32)
    return jnp.pad(a, ((0, rows - a.shape[0]), (0, cols - a.shape[1])))


def net_forward(x, params, *, max_tile_n=8192):
    """Pallas equivalent of Net.forward(x) for x of shape (N, 1)."""
    w1, b1, w2, b2, w3, b3, w4, b4 = params
    x = jnp.asarray(x, jnp.float32)
    n = x.shape[0]

    # (N, 1) -> (1, N): batch along the lane axis (layout-preserving reshape).
    xt = x.reshape(1, n)

    # Zero-pad the tiny parameters once (torch convention: weight is (out, in)).
    w1c = _pad2d(jnp.asarray(w1, jnp.float32).reshape(-1, 1), H, 1)   # (H, 1)
    b1c = _pad2d(jnp.asarray(b1, jnp.float32).reshape(-1, 1), H, 1)
    w2p = _pad2d(w2, H, H)                                            # (H, H)
    b2c = _pad2d(jnp.asarray(b2, jnp.float32).reshape(-1, 1), H, 1)
    w3p = _pad2d(w3, H, H)
    b3c = _pad2d(jnp.asarray(b3, jnp.float32).reshape(-1, 1), H, 1)
    w4c = _pad2d(jnp.asarray(w4, jnp.float32).reshape(1, -1).T, H, 1)  # (H, 1)
    b4s = jnp.asarray(b4, jnp.float32).reshape(1, 1)

    tile_n = n if n <= max_tile_n else max_tile_n
    grid = (pl.cdiv(n, tile_n),)

    resident = lambda i: (0, 0)  # weights: same block every step -> stays resident

    out = pl.pallas_call(
        _net_kernel,
        out_shape=jax.ShapeDtypeStruct((1, n), jnp.float32),
        grid_spec=pltpu.PrefetchScalarGridSpec(
            num_scalar_prefetch=0,
            grid=grid,
            in_specs=[
                pl.BlockSpec((1, tile_n), lambda i: (0, i)),   # x (lane-dense)
                pl.BlockSpec((H, 1), resident),                # w1 column
                pl.BlockSpec((H, 1), resident),                # b1 column
                pl.BlockSpec((H, H), resident),                # w2 padded
                pl.BlockSpec((H, 1), resident),                # b2 column
                pl.BlockSpec((H, H), resident),                # w3 padded
                pl.BlockSpec((H, 1), resident),                # b3 column
                pl.BlockSpec((H, 1), resident),                # w4 column
                pl.BlockSpec(memory_space=pltpu.SMEM),         # b4 scalar
            ],
            out_specs=pl.BlockSpec((1, tile_n), lambda i: (0, i)),
        ),
        compiler_params=pltpu.CompilerParams(
            dimension_semantics=("parallel",),  # independent batch tiles (megacore OK)
        ),
    )(xt, w1c, b1c, w2p, b2c, w3p, b3c, w4c, b4s)

    return out.reshape(n, 1)


def _init_params(key):
    # Same shapes/convention as torch nn.Linear: weight (out, in), bias (out,)
    dims = [(10, 1), (20, 10), (10, 20), (1, 10)]
    params = []
    for out_d, in_d in dims:
        key, kw, kb = jax.random.split(key, 3)
        bound = 1.0 / (in_d ** 0.5)
        params.append(jax.random.uniform(kw, (out_d, in_d), jnp.float32,
                                         -bound, bound))
        params.append(jax.random.uniform(kb, (out_d,), jnp.float32,
                                         -bound, bound))
    return tuple(params)


def _ref_forward(x, params):
    w1, b1, w2, b2, w3, b3, w4, b4 = params
    h = jnp.maximum(x @ w1.T + b1, 0.0)
    h = jnp.maximum(h @ w2.T + b2, 0.0)
    h = jnp.maximum(h @ w3.T + b3, 0.0)
    return h @ w4.T + b4


if __name__ == "__main__":
    key = jax.random.PRNGKey(0)
    kx, kp = jax.random.split(key)

    n = 2048  # small batch; model takes 1 input feature -> x: (N, 1)
    x = jax.random.normal(kx, (n, 1), dtype=jnp.float32)
    params = _init_params(kp)

    # tile 512 here to exercise a multi-step grid; the default (8192) keeps
    # small batches to a single block per the perf guidance.
    y = net_forward(x, params, max_tile_n=512)
    y = jax.block_until_ready(y)

    ref = _ref_forward(x, params)
    assert y.shape == ref.shape == (n, 1)
    assert jnp.allclose(y, ref, rtol=1e-5, atol=1e-5), float(
        jnp.max(jnp.abs(y - ref)))

    print("KERNEL_OK")
</pallas_src>

<mosaic_0001>
module attributes {stable_mosaic.version = 11 : i64} {
  func.func @_net_kernel(%arg0: i32, %arg1: memref<1x512xf32, #tpu.memory_space<vmem>>, %arg2: memref<32x1xf32, #tpu.memory_space<vmem>>, %arg3: memref<32x1xf32, #tpu.memory_space<vmem>>, %arg4: memref<32x32xf32, #tpu.memory_space<vmem>>, %arg5: memref<32x1xf32, #tpu.memory_space<vmem>>, %arg6: memref<32x32xf32, #tpu.memory_space<vmem>>, %arg7: memref<32x1xf32, #tpu.memory_space<vmem>>, %arg8: memref<32x1xf32, #tpu.memory_space<vmem>>, %arg9: memref<1x1xf32, #tpu.memory_space<smem>>, %arg10: memref<1x512xf32, #tpu.memory_space<vmem>>) attributes {dimension_semantics = [#tpu.dimension_semantics<parallel>], iteration_bounds = array<i64: 4>, scalar_prefetch = 0 : i64, scratch_operands = 0 : i64, tpu.core_type = #tpu.core_type<tc>, window_params = [{transform_indices = @transform_0, window_bounds = array<i64: 1, 512>}, {pipeline_mode = #tpu.pipeline_mode<synchronous>, transform_indices = @transform_1, window_bounds = array<i64: 32, 1>}, {pipeline_mode = #tpu.pipeline_mode<synchronous>, transform_indices = @transform_2, window_bounds = array<i64: 32, 1>}, {pipeline_mode = #tpu.pipeline_mode<synchronous>, transform_indices = @transform_3, window_bounds = array<i64: 32, 32>}, {pipeline_mode = #tpu.pipeline_mode<synchronous>, transform_indices = @transform_4, window_bounds = array<i64: 32, 1>}, {pipeline_mode = #tpu.pipeline_mode<synchronous>, transform_indices = @transform_5, window_bounds = array<i64: 32, 32>}, {pipeline_mode = #tpu.pipeline_mode<synchronous>, transform_indices = @transform_6, window_bounds = array<i64: 32, 1>}, {pipeline_mode = #tpu.pipeline_mode<synchronous>, transform_indices = @transform_7, window_bounds = array<i64: 32, 1>}, {transform_indices = @transform_8, window_bounds = array<i64: 1, 1>}, {transform_indices = @transform_9, window_bounds = array<i64: 1, 512>}]} {
    %c0 = arith.constant 0 : index
    %c0_0 = arith.constant 0 : index
    %0 = vector.load %arg1[%c0, %c0_0] : memref<1x512xf32, #tpu.memory_space<vmem>>, vector<1x512xf32>
    %c0_1 = arith.constant 0 : index
    %c0_2 = arith.constant 0 : index
    %1 = vector.load %arg2[%c0_1, %c0_2] : memref<32x1xf32, #tpu.memory_space<vmem>>, vector<32x1xf32>
    %2 = vector.broadcast %1 : vector<32x1xf32> to vector<32x512xf32>
    %3 = vector.broadcast %0 : vector<1x512xf32> to vector<32x512xf32>
    %4 = arith.mulf %2, %3 : vector<32x512xf32>
    %c0_3 = arith.constant 0 : index
    %c0_4 = arith.constant 0 : index
    %5 = vector.load %arg3[%c0_3, %c0_4] : memref<32x1xf32, #tpu.memory_space<vmem>>, vector<32x1xf32>
    %6 = vector.broadcast %5 : vector<32x1xf32> to vector<32x512xf32>
    %7 = arith.addf %4, %6 : vector<32x512xf32>
    %cst = arith.constant 0.000000e+00 : f32
    %8 = vector.broadcast %cst : f32 to vector<32x512xf32>
    %9 = arith.maximumf %7, %8 : vector<32x512xf32>
    %c0_5 = arith.constant 0 : index
    %c0_6 = arith.constant 0 : index
    %10 = vector.load %arg4[%c0_5, %c0_6] : memref<32x32xf32, #tpu.memory_space<vmem>>, vector<32x32xf32>
    %cst_7 = arith.constant dense<0.000000e+00> : vector<32x512xf32>
    %11 = tpu.matmul %10, %9, %cst_7 {dimension_numbers = #tpu.dot_dimension_numbers<[1], [0], [0], [1], [0, 0, 1, 1], [], []>} : vector<32x32xf32>, vector<32x512xf32>, vector<32x512xf32> -> vector<32x512xf32>
    %c0_8 = arith.constant 0 : index
    %c0_9 = arith.constant 0 : index
    %12 = vector.load %arg5[%c0_8, %c0_9] : memref<32x1xf32, #tpu.memory_space<vmem>>, vector<32x1xf32>
    %13 = vector.broadcast %12 : vector<32x1xf32> to vector<32x512xf32>
    %14 = arith.addf %11, %13 : vector<32x512xf32>
    %cst_10 = arith.constant 0.000000e+00 : f32
    %15 = vector.broadcast %cst_10 : f32 to vector<32x512xf32>
    %16 = arith.maximumf %14, %15 : vector<32x512xf32>
    %c0_11 = arith.constant 0 : index
    %c0_12 = arith.constant 0 : index
    %17 = vector.load %arg6[%c0_11, %c0_12] : memref<32x32xf32, #tpu.memory_space<vmem>>, vector<32x32xf32>
    %cst_13 = arith.constant dense<0.000000e+00> : vector<32x512xf32>
    %18 = tpu.matmul %17, %16, %cst_13 {dimension_numbers = #tpu.dot_dimension_numbers<[1], [0], [0], [1], [0, 0, 1, 1], [], []>} : vector<32x32xf32>, vector<32x512xf32>, vector<32x512xf32> -> vector<32x512xf32>
    %c0_14 = arith.constant 0 : index
    %c0_15 = arith.constant 0 : index
    %19 = vector.load %arg7[%c0_14, %c0_15] : memref<32x1xf32, #tpu.memory_space<vmem>>, vector<32x1xf32>
    %20 = vector.broadcast %19 : vector<32x1xf32> to vector<32x512xf32>
    %21 = arith.addf %18, %20 : vector<32x512xf32>
    %cst_16 = arith.constant 0.000000e+00 : f32
    %22 = vector.broadcast %cst_16 : f32 to vector<32x512xf32>
    %23 = arith.maximumf %21, %22 : vector<32x512xf32>
    %c0_17 = arith.constant 0 : index
    %c0_18 = arith.constant 0 : index
    %24 = vector.load %arg8[%c0_17, %c0_18] : memref<32x1xf32, #tpu.memory_space<vmem>>, vector<32x1xf32>
    %25 = vector.broadcast %24 : vector<32x1xf32> to vector<32x512xf32>
    %26 = arith.mulf %25, %23 : vector<32x512xf32>
    %cst_19 = arith.constant dense<0.000000e+00> : vector<512xf32>
    %27 = vector.multi_reduction <add>, %26, %cst_19 [0] : vector<32x512xf32> to vector<512xf32>
    %28 = vector.shape_cast %27 : vector<512xf32> to vector<1x512xf32>
    %c0_20 = arith.constant 0 : index
    %c0_21 = arith.constant 0 : index
    %29 = memref.load %arg9[%c0_20, %c0_21] : memref<1x1xf32, #tpu.memory_space<smem>>
    %30 = vector.broadcast %29 : f32 to vector<1x512xf32>
    %31 = arith.addf %28, %30 : vector<1x512xf32>
    %c0_22 = arith.constant 0 : index
    %c0_23 = arith.constant 0 : index
    %32 = vector.load %arg10[%c0_22, %c0_23] : memref<1x512xf32, #tpu.memory_space<vmem>>, vector<1x512xf32>
    tpu.vector_store %arg10[%c0_22, %c0_23], %31 {strides = array<i32>} : memref<1x512xf32, #tpu.memory_space<vmem>>, vector<1x512xf32>,
    return
  }
  func.func @transform_0(%arg0: i32) -> (i32, i32) {
    %c0_i32 = arith.constant 0 : i32
    %c0_i32_0 = arith.constant 0 : i32
    return %c0_i32, %arg0 : i32, i32
  }
  func.func @transform_1(%arg0: i32) -> (i32, i32) {
    %c0_i32 = arith.constant 0 : i32
    %c0_i32_0 = arith.constant 0 : i32
    %c0_i32_1 = arith.constant 0 : i32
    return %c0_i32, %c0_i32_0 : i32, i32
  }
  func.func @transform_2(%arg0: i32) -> (i32, i32) {
    %c0_i32 = arith.constant 0 : i32
    %c0_i32_0 = arith.constant 0 : i32
    %c0_i32_1 = arith.constant 0 : i32
    return %c0_i32, %c0_i32_0 : i32, i32
  }
  func.func @transform_3(%arg0: i32) -> (i32, i32) {
    %c0_i32 = arith.constant 0 : i32
    %c0_i32_0 = arith.constant 0 : i32
    %c0_i32_1 = arith.constant 0 : i32
    return %c0_i32, %c0_i32_0 : i32, i32
  }
  func.func @transform_4(%arg0: i32) -> (i32, i32) {
    %c0_i32 = arith.constant 0 : i32
    %c0_i32_0 = arith.constant 0 : i32
    %c0_i32_1 = arith.constant 0 : i32
    return %c0_i32, %c0_i32_0 : i32, i32
  }
  func.func @transform_5(%arg0: i32) -> (i32, i32) {
    %c0_i32 = arith.constant 0 : i32
    %c0_i32_0 = arith.constant 0 : i32
    %c0_i32_1 = arith.constant 0 : i32
    return %c0_i32, %c0_i32_0 : i32, i32
  }
  func.func @transform_6(%arg0: i32) -> (i32, i32) {
    %c0_i32 = arith.constant 0 : i32
    %c0_i32_0 = arith.constant 0 : i32
    %c0_i32_1 = arith.constant 0 : i32
    return %c0_i32, %c0_i32_0 : i32, i32
  }
  func.func @transform_7(%arg0: i32) -> (i32, i32) {
    %c0_i32 = arith.constant 0 : i32
    %c0_i32_0 = arith.constant 0 : i32
    %c0_i32_1 = arith.constant 0 : i32
    return %c0_i32, %c0_i32_0 : i32, i32
  }
  func.func @transform_8(%arg0: i32) -> (i32, i32) {
    %c0_i32 = arith.constant 0 : i32
    %c0_i32_0 = arith.constant 0 : i32
    %c0_i32_1 = arith.constant 0 : i32
    return %c0_i32, %c0_i32_0 : i32, i32
  }
  func.func @transform_9(%arg0: i32) -> (i32, i32) {
    %c0_i32 = arith.constant 0 : i32
    %c0_i32_0 = arith.constant 0 : i32
    return %c0_i32, %arg0 : i32, i32
  }
}

</mosaic_0001>

<bundles_post_ra>
// kernel: tpu_custom_call.1
= control target key start
LH: loop header
LB: loop body
LE: loop exit
PB: predicated region body
PF: predicated region fallthrough
CT: control target
= control target key end

     0   :  { %s1508_s0 = inlined_call_operand.vmem [shape: f32[1,2048], index: 0, kind: input, shape index: {}]   ;;  %s1509_s1 = inlined_call_operand.vmem [shape: f32[32,1], index: 1, kind: input, shape index: {}]   ;;  %s1510_s2 = inlined_call_operand.vmem [shape: f32[32,1], index: 2, kind: input, shape index: {}]   ;;  %s1511_s3 = inlined_call_operand.vmem [shape: f32[32,32], index: 3, kind: input, shape index: {}]   ;;  %s1512_s4 = inlined_call_operand.vmem [shape: f32[32,1], index: 4, kind: input, shape index: {}]   ;;  %s1513_s5 = inlined_call_operand.vmem [shape: f32[32,32], index: 5, kind: input, shape index: {}]   ;;  %s1514_s6 = inlined_call_operand.vmem [shape: f32[32,1], index: 6, kind: input, shape index: {}]   ;;  %s1515_s7 = inlined_call_operand.vmem [shape: f32[32,1], index: 7, kind: input, shape index: {}]   ;;  %s1516_s8 = inlined_call_operand.<no memory space> [shape: f32[1,1], index: 8, kind: input, shape index: {}]   ;;  %s1517_s9 = inlined_call_operand.hbm [shape: f32[1,2048], index: 9, kind: output, shape index: {}]  }
   0x1   :  { %14 = sst [smem:[#allocation2]] %s1516_s8 }
   0x2   :  { %15 = vsyncpa [#allocation4], 0 }
   0x3   :  { %17 = vsyncpa [#allocation4 + $0x1], 0  ;;  %s1297_s11 = smov 0   ;;  %s1299_s12 = smov 0  }
   0x4   :  { %s1301_s13 = smov 0   ;;  %s1303_s14 = smov 0  }
   0x5 LB: > { %s1318_s8 = sadd.s32 4294967295, %s1238_s14   ;;  %s1106_s15 = sadd.s32 4294967294, %s1238_s14   ;;  %s1238_s14 = sphi %s1303_s14, %s1523_s14   ;;  %s1234_s13 = sphi %s1301_s13, %s1522_s13   ;;  %s1230_s12 = sphi %s1299_s12, %s1521_s12   ;;  %s1226_s11 = sphi %s1297_s11, %s1520_s11  }
   0x6   : > { %s1322_s16 = sadd.s32 1, %s1238_s14   ;;  %s224_s17 = sadd.s32 1, %s1234_s13 }
   0x7   : > { %s221_s18 = ssub.s32 %s1238_s14, %s1322_s16  ;;  %p234_p0 = scmp.ne.s32.totalorder %s1234_s13, %s1230_s12 }
   0x8   : > { %p222_p1 = scmp.eq.s32.totalorder %s221_s18, 0  ;;  %p235_p2 = scmp.eq.s32.totalorder %s1318_s8, 3 }
   0x9   : > { %p240_p3 = scmp.ne.s32.totalorder %s1230_s12, %s1226_s11  ;;  %p241_p4 = scmp.eq.s32.totalorder %s1106_s15, 3 }
   0xa   : > { %s1333_s19 = scalar_select %p222_p1, %s1234_s13, %s224_s17  }
   0xb   : > { %p1335_p5 = por %p235_p2, %p234_p0  ;;  %p1339_p6 = por %p241_p4, %p240_p3 }
   0xc   : > { %p1109_p7 = scmp.ge.s32.totalorder %s1238_s14, 1  ;;  %p291_p8 = scmp.lt.s32.totalorder %s1238_s14, 5 }
   0xe   : > { %p292_p9 = pnand %p1109_p7, %p291_p8 }
   0xf   : > { %s1111_s23 = sshll.u32 (!%p292_p9), %s1318_s8, 2  ;;  %s995_s30 = sld [smem:[#allocation2]] (!%p292_p9) }
  0x10   : > { %295 = sbr.rel (%p292_p9) target bundleno = 636 (0x27c), region = 56  ;;  %p327_p10 = scmp.lt.s32.totalorder (!%p292_p9), %s1111_s23, 15 }
  0x11   : > { %s323_s10 = sand.u32 (!%p292_p9), 1, %s1230_s12   ;;  %s1133_s17 = sshll.u32 (!%p292_p9), %s1318_s8, 6 }
  0x12   : > { %s1110_s15 = sshll.u32 (!%p292_p9), %s323_s10, 2  ;;  %s1048_s25 = scalar_lea.hbm (!%p292_p9), %s1517_s9, %s1133_s17 }
  0x13   : > { %s325_s18 = scalar_lea.vmem (!%p292_p9), [#allocation3], %s1110_s15  ;;  %s1243_s28 = smov (!%p292_p9), [#allocation3]  }
  0x14   : > { %s1050_s22 = sshll.u32 (!%p292_p9), %s325_s18, 4  ;;  %s1182_s8 = sshll.u32 (!%p292_p9), %s1243_s28, 4  ;;  %s1051_s22 = int_to_ptr.vmem [resolvable:$true] %s1050_s22  ;;  %s1183_s8 = int_to_ptr.vmem [resolvable:$false] %s1182_s8 }
  0x15   : > { %v397_v0 = vld [vmem:[%s1510_s2 + $0x18] sm:$0xff]  ;;  %v1240_v2 = vmov 0   ;;  %v335_v3 = vld [vmem:[%s1509_s1 + $0x10] sm:$0xff]  ;;  %v334_v4 = vld [vmem:[%s1509_s1 + $0x8] sm:$0xff]  ;;  %v1241_v11 = vmov 0.0   ;;  %v358_v22 = vlaneseq  ;;  %s1525_s23 = smov (!%p327_p10, %s1111_s23), 15  ;;  %p1185_p0 = scmp.lt.s32.totalorder %s1051_s22, %s1183_s8 }
  0x16   : > { %v336_v1 = vld [vmem:[%s1509_s1 + $0x18] sm:$0xff]  ;;  %1177 = vset.pattern.permute.xlu1 %v1240_v2  ;;  %1176 = vset.pattern.permute.xlu0 %v1240_v2  ;;  %v396_v5 = vld [vmem:[%s1510_s2 + $0x10] sm:$0xff]  ;;  %v333_v6 = vld [vmem:[%s1509_s1] sm:$0xff]  ;;  %s329_s26 = scalar_lea.vmem %s1508_s0, %s1525_s23  ;;  %vm478_vm0 = vcmask 261120   ;;  %s1178_s27 = scalar_lea.vmem %s1051_s22, 64 }
  0x17   : > { %415 = vperm.xlu1 %1177, %v397_v0   ;;  %354 = vperm.xlu0 %1176, %v336_v1   ;;  %v395_v7 = vld [vmem:[%s1510_s2 + $0x8] sm:$0xff]  ;;  %v394_v8 = vld [vmem:[%s1510_s2] sm:$0xff]  ;;  %v457_v9 = vld [vmem:[%s1512_s4 + $0x18] sm:$0xff]  ;;  %v1409_v23 = vshrl.u32 %v358_v22, 7  ;;  %vm1032_vm1 = vcmp.lt.s32.totalorder %v358_v22, 512  ;;  %p1179_p11 = scmp.ne.s32.totalorder %s1051_s22, %s1178_s27  ;;  %s1184_s29 = scalar_lea.vmem %s1183_s8, 128 }
  0x18   : > { %v456_v10 = vld [vmem:[%s1512_s4 + $0x10] sm:$0xff]  ;;  %555 = vmatprep.mubr.f32.mxu0 %v1241_v11  ;;  %644 = vmatprep.mubr.f32.mxu1 %v1241_v11  ;;  %v455_v12 = vld [vmem:[%s1512_s4 + $0x8] sm:$0xff]  ;;  %v454_v13 = vld [vmem:[%s1512_s4] sm:$0xff]  ;;  %p1186_p1 = scmp.lt.s32.totalorder %s1184_s29, %s1178_s27 }
  0x19   : > { %v689_v14 = vld [vmem:[%s1514_s6] sm:$0xff]  ;;  %v690_v15 = vld [vmem:[%s1514_s6 + $0x8] sm:$0xff]  ;;  %v691_v16 = vld [vmem:[%s1514_s6 + $0x10] sm:$0xff]  ;;  %v360_v24 = vsub.s32 0, %v1409_v23  ;;  %v364_v25 = vsub.s32 1, %v1409_v23  ;;  %v368_v26 = vsub.s32 2, %v1409_v23  ;;  %p1180_p12 = pnand %p1179_p11, %p1335_p5 }
  0x1a   : > { %v692_v17 = vld [vmem:[%s1514_s6 + $0x18] sm:$0xff]  ;;  %v919_v18 = vld [vmem:[%s1515_s7] sm:$0xff]  ;;  %v920_v19 = vld [vmem:[%s1515_s7 + $0x8] sm:$0xff]  ;;  %v372_v27 = vsub.s32 3, %v1409_v23  ;;  %p1187_p2 = por %p1186_p1, %p1185_p0 }
  0x1b   : > { %349 = vperm.xlu0 %1176, %v335_v3   ;;  %344 = vperm.xlu1 %1177, %v334_v4   ;;  %v921_v20 = vld [vmem:[%s1515_s7 + $0x10] sm:$0xff]  ;;  %v922_v21 = vld [vmem:[%s1515_s7 + $0x18] sm:$0xff]  ;;  %v332_v28 = vld [vmem:[%s329_s26] sm:$0xf]  ;;  %s1036_s26 = scalar_lea.sflag [#allocation4], %s323_s10  ;;  %p1181_p13 = pneg %p1180_p12 }
  0x1c   : > { %v361_v29 = vrot.slane %v332_v28, %v360_v24  ;;  %v365_v30 = vrot.slane %v332_v28, %v364_v25  ;;  %v369_v31 = vrot.slane %v332_v28, %v368_v26  ;;  %v373_v32 = vrot.slane %v332_v28, %v372_v27  ;;  %v450_v28 = vld [vmem:[%s1511_s3] sm:$0xff] }
  0x1d   : > { %p1188_p3 = pnand %p1187_p2, %p1181_p13 }
  0x1f   : > { %410 = vperm.xlu0 %1176, %v396_v5   ;;  %339 = vperm.xlu1 %1177, %v333_v6  }
  0x23   : > { %405 = vperm.xlu0 %1176, %v395_v7   ;;  %400 = vperm.xlu1 %1177, %v394_v8  }
  0x27   : > { %475 = vperm.xlu0 %1176, %v457_v9   ;;  %470 = vperm.xlu1 %1177, %v456_v10  }
  0x2b   : > { %465 = vperm.xlu0 %1176, %v455_v12   ;;  %460 = vperm.xlu1 %1177, %v454_v13  }
  0x2f   : > { %695 = vperm.xlu0 %1176, %v689_v14   ;;  %700 = vperm.xlu1 %1177, %v690_v15  }
  0x33   : > { %705 = vperm.xlu0 %1176, %v691_v16   ;;  %710 = vperm.xlu1 %1177, %v692_v17  }
  0x37   : > { %925 = vperm.xlu0 %1176, %v919_v18   ;;  %930 = vperm.xlu1 %1177, %v920_v19  }
  0x3b   : > { %935 = vperm.xlu0 %1176, %v921_v20   ;;  %940 = vperm.xlu1 %1177, %v922_v21  }
  0x92   : > { %v416_v33 = vpop.permute.xlu1 %415  ;;  %v355_v34 = vpop.permute.xlu0 %354 }
  0x93   : > { %v391_v35 = vmul.f32 %v365_v30, %v355_v34  ;;  %v393_v36 = vmul.f32 %v373_v32, %v355_v34  ;;  %v390_v37 = vmul.f32 %v361_v29, %v355_v34  ;;  %v392_v38 = vmul.f32 %v369_v31, %v355_v34 }
  0x95   : > { %v431_v39 = vadd.f32 %v416_v33, %v391_v35  ;;  %v433_v40 = vadd.f32 %v416_v33, %v393_v36  ;;  %v430_v41 = vadd.f32 %v416_v33, %v390_v37  ;;  %v432_v42 = vadd.f32 %v416_v33, %v392_v38 }
  0x96   : > { %v350_v43 = vpop.permute.xlu0 %349  ;;  %v345_v44 = vpop.permute.xlu1 %344 }
  0x97   : > { %v447_v45 = vmax.f32 %v431_v39, 0.0  ;;  %v449_v46 = vmax.f32 %v433_v40, 0.0  ;;  %v446_v47 = vmax.f32 %v430_v41, 0.0  ;;  %v448_v48 = vmax.f32 %v432_v42, 0.0 }
  0x98   : > { %v386_v49 = vmul.f32 %v361_v29, %v350_v43  ;;  %v387_v50 = vmul.f32 %v365_v30, %v350_v43  ;;  %v388_v51 = vmul.f32 %v369_v31, %v350_v43  ;;  %v389_v52 = vmul.f32 %v373_v32, %v350_v43 }
  0x99   : > { %v382_v55 = vmul.f32 %v361_v29, %v345_v44  ;;  %v383_v56 = vmul.f32 %v365_v30, %v345_v44  ;;  %v384_v57 = vmul.f32 %v369_v31, %v345_v44  ;;  %515 = vmatprep.subr.mxu0 %v447_v45  ;;  %604 = vmatprep.subr.mxu1 %v449_v46 }
  0x9a   : > { %v411_v53 = vpop.permute.xlu0 %410  ;;  %v340_v54 = vpop.permute.xlu1 %339  ;;  %v385_v58 = vmul.f32 %v373_v32, %v345_v44  ;;  %516 = vmatpush1.msra.mxu0 %v446_v47  ;;  %605 = vmatpush1.msra.mxu1 %v448_v48 }
  0x9b   : > { %v427_v59 = vadd.f32 %v411_v53, %v387_v50  ;;  %v429_v60 = vadd.f32 %v411_v53, %v389_v52  ;;  %v378_v61 = vmul.f32 %v361_v29, %v340_v54  ;;  %v379_v62 = vmul.f32 %v365_v30, %v340_v54  ;;  %v451_v29 = vld [vmem:[%s1511_s3 + $0x8] sm:$0xff]  ;;  %v452_v30 = vld [vmem:[%s1511_s3 + $0x10] sm:$0xff] }
  0x9c   : > { %v426_v63 = vadd.f32 %v411_v53, %v386_v49  ;;  %v428_v0 = vadd.f32 %v411_v53, %v388_v51  ;;  %v380_v1 = vmul.f32 %v369_v31, %v340_v54  ;;  %v381_v2 = vmul.f32 %v373_v32, %v340_v54  ;;  %v453_v31 = vld [vmem:[%s1511_s3 + $0x18] sm:$0xff] }
  0x9d   : > { %v443_v5 = vmax.f32 %v427_v59, 0.0  ;;  %v445_v6 = vmax.f32 %v429_v60, 0.0 }
  0x9e   : > { %v406_v3 = vpop.permute.xlu0 %405  ;;  %v401_v4 = vpop.permute.xlu1 %400  ;;  %v442_v7 = vmax.f32 %v426_v63, 0.0  ;;  %v444_v8 = vmax.f32 %v428_v0, 0.0 }
  0x9f   : > { %v423_v9 = vadd.f32 %v406_v3, %v383_v56  ;;  %v425_v10 = vadd.f32 %v406_v3, %v385_v58  ;;  %517 = vmatprep.subr.mxu0 %v443_v5  ;;  %606 = vmatprep.subr.mxu1 %v445_v6  ;;  %v422_v12 = vadd.f32 %v406_v3, %v382_v55 }
  0xa0   : > { %v424_v13 = vadd.f32 %v406_v3, %v384_v57  ;;  %v419_v14 = vadd.f32 %v401_v4, %v379_v62  ;;  %518 = vmatpush1.msra.mxu0 %v442_v7  ;;  %607 = vmatpush1.msra.mxu1 %v444_v8  ;;  %v421_v17 = vadd.f32 %v401_v4, %v381_v2 }
  0xa1   : > { %v439_v15 = vmax.f32 %v423_v9, 0.0  ;;  %v441_v16 = vmax.f32 %v425_v10, 0.0  ;;  %v418_v18 = vadd.f32 %v401_v4, %v378_v61  ;;  %v438_v19 = vmax.f32 %v422_v12, 0.0 }
  0xa2   : > { %v440_v20 = vmax.f32 %v424_v13, 0.0  ;;  %v420_v21 = vadd.f32 %v401_v4, %v380_v1  ;;  %v435_v24 = vmax.f32 %v419_v14, 0.0  ;;  %v437_v25 = vmax.f32 %v421_v17, 0.0  ;;  %v476_v42 = vpop.permute.xlu0 %475  ;;  %v471_v45 = vpop.permute.xlu1 %470 }
  0xa3   : > { %519 = vmatprep.subr.mxu0 %v439_v15  ;;  %608 = vmatprep.subr.mxu1 %v441_v16  ;;  %v434_v26 = vmax.f32 %v418_v18, 0.0 }
  0xa4   : > { %520 = vmatpush1.msra.mxu0 %v438_v19  ;;  %609 = vmatpush1.msra.mxu1 %v440_v20  ;;  %v436_v27 = vmax.f32 %v420_v21, 0.0  ;;  %v685_v21 = vld [vmem:[%s1513_s5] sm:$0xff] }
  0xa5   : > { %521 = vmatprep.subr.mxu0 %v435_v24  ;;  %610 = vmatprep.subr.mxu1 %v437_v25  ;;  %v686_v24 = vld [vmem:[%s1513_s5 + $0x8] sm:$0xff]  ;;  %v687_v25 = vld [vmem:[%s1513_s5 + $0x10] sm:$0xff] }
  0xa6   : > { %522 = vmatpush1.msra.mxu0 %v434_v26  ;;  %611 = vmatpush1.msra.mxu1 %v436_v27  ;;  %v466_v56 = vpop.permute.xlu0 %465  ;;  %v461_v63 = vpop.permute.xlu1 %460  ;;  %v688_v26 = vld [vmem:[%s1513_s5 + $0x18] sm:$0xff] }
  0xa7   : > { %1112 = vmatmul.mubr.msk.f32.vlgmr.msra.gmra.mxu0 %vm478_vm0, %v450_v28  ;;  %1116 = vmatmul.mubr.msk.f32.vlgmr.msra.gmra.mxu1 %vm478_vm0, %v450_v28 }
  0xa8   : > { %561 = vmatprep.mubr.f32.mxu0 %v1241_v11  ;;  %650 = vmatprep.mubr.f32.mxu1 %v1241_v11 }
  0xaa   : > { %v696_v27 = vpop.permute.xlu0 %695  ;;  %v701_v28 = vpop.permute.xlu1 %700 }
  0xab   : > { %1113 = vmatmul.mubr.msk.f32.gmra.mxu0 %vm478_vm0, %v451_v29  ;;  %1117 = vmatmul.mubr.msk.f32.gmra.mxu1 %vm478_vm0, %v451_v29 }
  0xac   : > { %567 = vmatprep.mubr.f32.mxu0 %v1241_v11  ;;  %656 = vmatprep.mubr.f32.mxu1 %v1241_v11 }
  0xae   : > { %v706_v29 = vpop.permute.xlu0 %705 }
  0xaf   : > { %1114 = vmatmul.mubr.msk.f32.gmra.mxu0 %vm478_vm0, %v452_v30  ;;  %1118 = vmatmul.mubr.msk.f32.gmra.mxu1 %vm478_vm0, %v452_v30 }
  0xb0   : > { %573 = vmatprep.mubr.f32.mxu0 %v1241_v11  ;;  %662 = vmatprep.mubr.f32.mxu1 %v1241_v11 }
  0xb3   : > { %1115 = vmatmul.mubr.msk.f32.gmra.mxu0 %vm478_vm0, %v453_v31  ;;  %1119 = vmatmul.mubr.msk.f32.gmra.mxu1 %vm478_vm0, %v453_v31 }
  0xb4   : > { %789 = vmatprep.mubr.f32.mxu0 %v1241_v11  ;;  %878 = vmatprep.mubr.f32.mxu1 %v1241_v11 }
 0x167   : > { %v557_v32 = vpop.f32.mrf.mxu0  ;;  %v646_v33 = vpop.f32.mrf.mxu1 }
 0x168   : > { %v558_v8 = vadd.f32 %v557_v32, %v461_v63  ;;  %v647_v9 = vadd.f32 %v646_v33, %v461_v63 }
 0x169   : > { %v559_v34 = vpop.f32.mrf.mxu0  ;;  %v648_v35 = vpop.f32.mrf.mxu1 }
 0x16a   : > { %v560_v4 = vadd.f32 %v559_v34, %v461_v63  ;;  %v649_v5 = vadd.f32 %v648_v35, %v461_v63  ;;  %v669_v19 = vmax.f32 %v558_v8, 0.0  ;;  %v671_v20 = vmax.f32 %v647_v9, 0.0 }
 0x16b   : > { %v563_v36 = vpop.f32.mrf.mxu0  ;;  %v652_v37 = vpop.f32.mrf.mxu1 }
 0x16c   : > { %v564_v0 = vadd.f32 %v563_v36, %v466_v56  ;;  %v653_v1 = vadd.f32 %v652_v37, %v466_v56  ;;  %v670_v17 = vmax.f32 %v560_v4, 0.0  ;;  %v672_v18 = vmax.f32 %v649_v5, 0.0  ;;  %v711_v36 = vpop.permute.xlu1 %710 }
 0x16d   : > { %v565_v38 = vpop.f32.mrf.mxu0  ;;  %v654_v39 = vpop.f32.mrf.mxu1 }
 0x16e   : > { %v566_v59 = vadd.f32 %v565_v38, %v466_v56  ;;  %v655_v60 = vadd.f32 %v654_v39, %v466_v56  ;;  %v673_v15 = vmax.f32 %v564_v0, 0.0  ;;  %v675_v16 = vmax.f32 %v653_v1, 0.0 }
 0x16f   : > { %v569_v40 = vpop.f32.mrf.mxu0  ;;  %v658_v41 = vpop.f32.mrf.mxu1 }
 0x170   : > { %v570_v57 = vadd.f32 %v569_v40, %v471_v45  ;;  %v659_v58 = vadd.f32 %v658_v41, %v471_v45  ;;  %v674_v13 = vmax.f32 %v566_v59, 0.0  ;;  %v676_v14 = vmax.f32 %v655_v60, 0.0  ;;  %v926_v40 = vpop.permute.xlu0 %925 }
 0x171   : > { %v571_v43 = vpop.f32.mrf.mxu0  ;;  %v660_v44 = vpop.f32.mrf.mxu1 }
 0x172   : > { %v572_v52 = vadd.f32 %v571_v43, %v471_v45  ;;  %v661_v53 = vadd.f32 %v660_v44, %v471_v45  ;;  %v677_v10 = vmax.f32 %v570_v57, 0.0  ;;  %v679_v12 = vmax.f32 %v659_v58, 0.0 }
 0x173   : > { %v575_v46 = vpop.f32.mrf.mxu0  ;;  %v664_v47 = vpop.f32.mrf.mxu1 }
 0x174   : > { %v576_v48 = vadd.f32 %v575_v46, %v476_v42  ;;  %v665_v49 = vadd.f32 %v664_v47, %v476_v42  ;;  %v678_v6 = vmax.f32 %v572_v52, 0.0  ;;  %v680_v7 = vmax.f32 %v661_v53, 0.0  ;;  %v936_v0 = vpop.permute.xlu0 %935 }
 0x175   : > { %v577_v50 = vpop.f32.mrf.mxu0  ;;  %v666_v51 = vpop.f32.mrf.mxu1 }
 0x176   : > { %v578_v54 = vadd.f32 %v577_v50, %v476_v42  ;;  %v667_v55 = vadd.f32 %v666_v51, %v476_v42  ;;  %v681_v2 = vmax.f32 %v576_v48, 0.0  ;;  %v683_v3 = vmax.f32 %v665_v49, 0.0 }
 0x178   : > { %v682_v61 = vmax.f32 %v578_v54, 0.0  ;;  %v684_v62 = vmax.f32 %v667_v55, 0.0  ;;  %v931_v55 = vpop.permute.xlu1 %930 }
 0x17a   : > { %749 = vmatprep.subr.mxu0 %v682_v61  ;;  %838 = vmatprep.subr.mxu1 %v684_v62 }
 0x17b   : > { %750 = vmatpush1.msra.mxu0 %v681_v2  ;;  %839 = vmatpush1.msra.mxu1 %v683_v3 }
 0x17c   : > { %751 = vmatprep.subr.mxu0 %v678_v6  ;;  %840 = vmatprep.subr.mxu1 %v680_v7 }
 0x17d   : > { %752 = vmatpush1.msra.mxu0 %v677_v10  ;;  %841 = vmatpush1.msra.mxu1 %v679_v12 }
 0x17e   : > { %753 = vmatprep.subr.mxu0 %v674_v13  ;;  %842 = vmatprep.subr.mxu1 %v676_v14 }
 0x17f   : > { %754 = vmatpush1.msra.mxu0 %v673_v15  ;;  %843 = vmatpush1.msra.mxu1 %v675_v16 }
 0x180   : > { %755 = vmatprep.subr.mxu0 %v670_v17  ;;  %844 = vmatprep.subr.mxu1 %v672_v18 }
 0x181   : > { %756 = vmatpush1.msra.mxu0 %v669_v19  ;;  %845 = vmatpush1.msra.mxu1 %v671_v20 }
 0x182   : > { %1120 = vmatmul.mubr.msk.f32.vlgmr.msra.gmra.mxu0 %vm478_vm0, %v685_v21  ;;  %1124 = vmatmul.mubr.msk.f32.vlgmr.msra.gmra.mxu1 %vm478_vm0, %v685_v21 }
 0x183   : > { %795 = vmatprep.mubr.f32.mxu0 %v1241_v11  ;;  %884 = vmatprep.mubr.f32.mxu1 %v1241_v11 }
 0x186   : > { %1121 = vmatmul.mubr.msk.f32.gmra.mxu0 %vm478_vm0, %v686_v24  ;;  %1125 = vmatmul.mubr.msk.f32.gmra.mxu1 %vm478_vm0, %v686_v24 }
 0x187   : > { %801 = vmatprep.mubr.f32.mxu0 %v1241_v11  ;;  %890 = vmatprep.mubr.f32.mxu1 %v1241_v11 }
 0x18a   : > { %1122 = vmatmul.mubr.msk.f32.gmra.mxu0 %vm478_vm0, %v687_v25  ;;  %1126 = vmatmul.mubr.msk.f32.gmra.mxu1 %vm478_vm0, %v687_v25 }
 0x18b   : > { %807 = vmatprep.mubr.f32.mxu0 %v1241_v11  ;;  %896 = vmatprep.mubr.f32.mxu1 %v1241_v11 }
 0x18e   : > { %1123 = vmatmul.mubr.msk.f32.gmra.mxu0 %vm478_vm0, %v688_v26  ;;  %1127 = vmatmul.mubr.msk.f32.gmra.mxu1 %vm478_vm0, %v688_v26 }
 0x242   : > { %v791_v30 = vpop.f32.mrf.mxu0  ;;  %v880_v31 = vpop.f32.mrf.mxu1 }
 0x243   : > { %v792_v32 = vadd.f32 %v791_v30, %v696_v27  ;;  %v881_v33 = vadd.f32 %v880_v31, %v696_v27 }
 0x244   : > { %v793_v34 = vpop.f32.mrf.mxu0  ;;  %v882_v35 = vpop.f32.mrf.mxu1 }
 0x245   : > { %v794_v37 = vadd.f32 %v793_v34, %v696_v27  ;;  %v883_v11 = vadd.f32 %v882_v35, %v696_v27  ;;  %v903_v41 = vmax.f32 %v792_v32, 0.0  ;;  %v905_v42 = vmax.f32 %v881_v33, 0.0  ;;  %v941_v32 = vpop.permute.xlu1 %940 }
 0x246   : > { %v797_v38 = vpop.f32.mrf.mxu0  ;;  %v886_v39 = vpop.f32.mrf.mxu1 }
 0x247   : > { %v798_v43 = vadd.f32 %v797_v38, %v701_v28  ;;  %v887_v44 = vadd.f32 %v886_v39, %v701_v28  ;;  %v904_v49 = vmax.f32 %v794_v37, 0.0  ;;  %v906_v50 = vmax.f32 %v883_v11, 0.0 }
 0x248   : > { %v799_v45 = vpop.f32.mrf.mxu0  ;;  %v888_v46 = vpop.f32.mrf.mxu1  ;;  %v943_v60 = vmul.f32 %v926_v40, %v903_v41  ;;  %v945_v61 = vmul.f32 %v926_v40, %v905_v42 }
 0x249   : > { %v800_v47 = vadd.f32 %v799_v45, %v701_v28  ;;  %v889_v48 = vadd.f32 %v888_v46, %v701_v28  ;;  %v907_v51 = vmax.f32 %v798_v43, 0.0  ;;  %v909_v52 = vmax.f32 %v887_v44, 0.0 }
 0x24a   : > { %v803_v53 = vpop.f32.mrf.mxu0  ;;  %v892_v54 = vpop.f32.mrf.mxu1  ;;  %v944_v5 = vmul.f32 %v926_v40, %v904_v49  ;;  %v946_v6 = vmul.f32 %v926_v40, %v906_v50 }
 0x24b   : > { %v908_v56 = vmax.f32 %v800_v47, 0.0  ;;  %v910_v57 = vmax.f32 %v889_v48, 0.0  ;;  %v804_v58 = vadd.f32 %v803_v53, %v706_v29  ;;  %v893_v59 = vadd.f32 %v892_v54, %v706_v29 }
 0x24c   : > { %v805_v62 = vpop.f32.mrf.mxu0  ;;  %v894_v63 = vpop.f32.mrf.mxu1  ;;  %v947_v1 = vmul.f32 %v931_v55, %v907_v51  ;;  %v949_v2 = vmul.f32 %v931_v55, %v909_v52 }
 0x24d   : > { %v911_v3 = vmax.f32 %v804_v58, 0.0  ;;  %v913_v4 = vmax.f32 %v893_v59, 0.0  ;;  %v806_v7 = vadd.f32 %v805_v62, %v706_v29  ;;  %v895_v8 = vadd.f32 %v894_v63, %v706_v29 }
 0x24e   : > { %v809_v9 = vpop.f32.mrf.mxu0  ;;  %v898_v10 = vpop.f32.mrf.mxu1  ;;  %v948_v12 = vmul.f32 %v931_v55, %v908_v56  ;;  %v950_v13 = vmul.f32 %v931_v55, %v910_v57  ;;  %v959_v24 = vadd.f32 %v947_v1, %v943_v60  ;;  %v977_v25 = vadd.f32 %v949_v2, %v945_v61 }
 0x24f   : > { %v951_v14 = vmul.f32 %v936_v0, %v911_v3  ;;  %v953_v15 = vmul.f32 %v936_v0, %v913_v4  ;;  %v912_v16 = vmax.f32 %v806_v7, 0.0  ;;  %v914_v17 = vmax.f32 %v895_v8, 0.0 }
 0x250   : > { %v810_v18 = vadd.f32 %v809_v9, %v711_v36  ;;  %v899_v19 = vadd.f32 %v898_v10, %v711_v36  ;;  %v811_v20 = vpop.f32.mrf.mxu0  ;;  %v900_v21 = vpop.f32.mrf.mxu1  ;;  %v968_v33 = vadd.f32 %v948_v12, %v944_v5  ;;  %v986_v34 = vadd.f32 %v950_v13, %v946_v6 }
 0x251   : > { %v812_v26 = vadd.f32 %v811_v20, %v711_v36  ;;  %v901_v27 = vadd.f32 %v900_v21, %v711_v36  ;;  %v952_v28 = vmul.f32 %v936_v0, %v912_v16  ;;  %v954_v30 = vmul.f32 %v936_v0, %v914_v17 }
 0x252   : > { %v915_v31 = vmax.f32 %v810_v18, 0.0  ;;  %v917_v29 = vmax.f32 %v899_v19, 0.0  ;;  %v960_v11 = vadd.f32 %v959_v24, %v951_v14  ;;  %v978_v38 = vadd.f32 %v977_v25, %v953_v15 }
 0x253   : > { %v916_v35 = vmax.f32 %v812_v26, 0.0  ;;  %v918_v37 = vmax.f32 %v901_v27, 0.0  ;;  %v969_v41 = vadd.f32 %v968_v33, %v952_v28  ;;  %v987_v42 = vadd.f32 %v986_v34, %v954_v30 }
 0x254   : > { %v955_v39 = vmul.f32 %v941_v32, %v915_v31  ;;  %v957_v40 = vmul.f32 %v941_v32, %v917_v29  ;;  %v1242_v58 = vmov 1966171168   ;;  %v996_v8 = vstv %s995_s30 }
 0x255   : > { %v956_v43 = vmul.f32 %v941_v32, %v916_v35  ;;  %v958_v44 = vmul.f32 %v941_v32, %v918_v37  ;;  %v1008_v59 = vunpack.c.l.s4 %v1242_v58 }
 0x256   : > { %v961_v45 = vadd.f32 %v960_v11, %v955_v39  ;;  %v979_v46 = vadd.f32 %v978_v38, %v957_v40 }
 0x257   : > { %v970_v36 = vadd.f32 %v969_v41, %v956_v43  ;;  %v988_v47 = vadd.f32 %v987_v42, %v958_v44  ;;  %v1009_v4 = vunpack.c.0.s8 %v1008_v59 }
 0x258   : > { %v962_v48 = vrot.slane %v961_v45, 4  ;;  %v980_v49 = vrot.slane %v979_v46, 4 }
 0x259   : > { %v971_v50 = vrot.slane %v970_v36, 4  ;;  %v989_v51 = vrot.slane %v988_v47, 4  ;;  %v1012_v13 = vsub.s32 %v1009_v4, %v1409_v23 }
 0x25a   : > { %v963_v52 = vadd.f32 %v962_v48, %v961_v45  ;;  %v981_v53 = vadd.f32 %v980_v49, %v979_v46 }
 0x25b   : > { %v972_v54 = vadd.f32 %v971_v50, %v970_v36  ;;  %v990_v55 = vadd.f32 %v989_v51, %v988_v47 }
 0x25c   : > { %v964_v56 = vrot.slane %v963_v52, 2  ;;  %v982_v57 = vrot.slane %v981_v53, 2 }
 0x25d   : > { %v973_v60 = vrot.slane %v972_v54, 2  ;;  %v991_v61 = vrot.slane %v990_v55, 2 }
 0x25e   : > { %v965_v62 = vadd.f32 %v964_v56, %v963_v52  ;;  %v983_v63 = vadd.f32 %v982_v57, %v981_v53 }
 0x25f   : > { %v974_v0 = vadd.f32 %v973_v60, %v972_v54  ;;  %v992_v1 = vadd.f32 %v991_v61, %v990_v55 }
 0x260   : > { %v966_v2 = vrot.slane %v965_v62, 1  ;;  %v984_v3 = vrot.slane %v983_v63, 1 }
 0x261   : > { %v975_v5 = vrot.slane %v974_v0, 1  ;;  %v993_v6 = vrot.slane %v992_v1, 1 }
 0x262   : > { %v967_v7 = vadd.f32 %v966_v2, %v965_v62  ;;  %v985_v9 = vadd.f32 %v984_v3, %v983_v63 }
 0x263   : > { %v976_v10 = vadd.f32 %v975_v5, %v974_v0  ;;  %v994_v12 = vadd.f32 %v993_v6, %v992_v1 }
 0x264   : > { %v997_v14 = vadd.f32 %v996_v8, %v967_v7  ;;  %v999_v15 = vadd.f32 %v996_v8, %v985_v9 }
 0x265   : > { %v998_v16 = vadd.f32 %v996_v8, %v976_v10  ;;  %v1000_v17 = vadd.f32 %v996_v8, %v994_v12 }
 0x267   : > { %v1005_v18 = vcombine.low %v997_v14, %v998_v16  ;;  %v1006_v19 = vcombine.low %v999_v15, %v1000_v17 }
 0x269   : > { %v1013_v20 = vrot.slane %v1005_v18, %v1012_v13  ;;  %v1020_v21 = vrot.slane %v1006_v19, %v1012_v13 }
 0x26b   : > { %v1021_v24 = vcombine.low %v1013_v20, %v1020_v21 }
 0x26d   : > { %v1028_v25 = vrot.slane %v1021_v24, %v1012_v13 }
 0x26f   : > { %1034 = vst.msk [vmem:[%s325_s18] sm:$0xf] %vm1032_vm1, %v1028_v25 }
 0x270   : > { %1191 = shalt.err (!%p1188_p3)
}
 0x271   : > { %s1192_s30 = scalar_lea.hbm %s1048_s25, 64  ;;  %s1196_s17 = scalar_lea.hbm %s1517_s9, 256 }
 0x272   : > { %p1193_p4 = scmp.ne.s32.totalorder %s1048_s25, %s1192_s30  ;;  %p1197_p9 = scmp.lt.s32.totalorder %s1048_s25, %s1517_s9 }
 0x273   : > { %p1198_p10 = scmp.lt.s32.totalorder %s1196_s17, %s1192_s30 }
 0x274   : > { %p1194_p7 = pnand %p1193_p4, %p1335_p5 }
 0x275   : > { %p1199_p11 = por %p1198_p10, %p1197_p9 }
 0x276   : > { %p1195_p8 = pneg %p1194_p7 }
 0x278   : > { %p1200_p12 = pnand %p1199_p11, %p1195_p8 }
 0x27a   : > { %1203 = shalt.err (!%p1200_p12)
}
 0x27b   : > { %1134 = dma.vmem_to_hbm [thread:$0]  (%p1335_p5), %s1051_s22, 64, %s1048_s25, %s1036_s26  }
 0x27c PF: > { %p1140_p13 = scmp.ge.s32.totalorder %s1238_s14, 2  ;;  %s1062_s24 = sand.u32 1, %s1226_s11  }
 0x27d   : > { %s1063_s27 = scalar_lea.sflag [#allocation4], %s1062_s24 }
 0x27e   : > { %p1137_p0 = pnand %p1140_p13, %p1339_p6 }
 0x280   : > { %p1138_p1 = pneg %p1137_p0 }
 0x282   : > { %1221 = dma.done.wait (%p1138_p1), %s1063_s27, 64  }
 0x283   : > { %1223 = vsyncadd (%p1138_p1), %s1063_s27, 4294967232  ;;  %p20_p2 = scmp.ge.s32.totalorder %s1322_s16, 6   ;;  %s1520_s11 = smov %s1230_s12 }
 0x284   : > { %s1521_s12 = smov %s1234_s13  ;;  %s1522_s13 = smov %s1333_s19 }
 0x285   : > { %s1523_s14 = smov %s1322_s16  ;;  %22 = sbr.rel (!%p20_p2) target bundleno = 5 (0x5), region = 91 }
 0x28a   :  { %1068 = vsyncpa [#allocation4], 1 }
 0x28b   :  { %1070 = vsyncpa [#allocation4 + $0x1], 1 }

</bundles_post_ra>
